<compile_context>
chip_gen: v7x
topology: tpu7x:2x2x1
jax: 0.10.0
libtpu: 0.0.40
codegen_flags: <defaults>
</compile_context>

<pallas_src>
import jax
import jax.numpy as jnp
from jax.experimental import pallas as pl
from jax.experimental.pallas import tpu as pltpu

OUT_PAD = 128  # lane-dense padded output width


def _round_up(n, m):
    return ((n + m - 1) // m) * m


def _linear_kernel(x_ref, w_ref, b_ref, o_ref):
    # x_ref: [TILE_B, in_f], w_ref: [in_f, 128], b_ref: [1, 128], o_ref: [TILE_B, 128]
    y = jnp.dot(x_ref[...], w_ref[...], preferred_element_type=jnp.float32)
    y = y + b_ref[...]
    o_ref[...] = y.astype(o_ref.dtype)


def logistics_forward(x, w, b, tile_b=None):
    """Forward pass of Logistics: y = x @ w.T + b.

    x: [batch, 27] float32
    w: [4, 27]     float32  (PyTorch nn.Linear weight layout [out, in])
    b: [4]         float32
    returns [batch, 4] float32
    """
    batch, in_f = x.shape
    out_f = w.shape[0]

    # Lane-dense padded parameters (zero columns beyond out_f are harmless).
    w_pad = jnp.zeros((in_f, OUT_PAD), x.dtype).at[:, :out_f].set(w.T)
    b_pad = jnp.zeros((1, OUT_PAD), x.dtype).at[:, :out_f].set(b)

    # Batch tile: multiple of 8 sublanes; cap so 2 bufs x (x + out) << VMEM.
    if tile_b is None:
        tile_b = min(4096, _round_up(batch, 8))
    padded_batch = _round_up(batch, tile_b)
    if padded_batch != batch:
        x = jnp.pad(x, ((0, padded_batch - batch), (0, 0)))
    n_tiles = padded_batch // tile_b

    y = pl.pallas_call(
        _linear_kernel,
        out_shape=jax.ShapeDtypeStruct((padded_batch, OUT_PAD), x.dtype),
        grid_spec=pl.GridSpec(
            grid=(n_tiles,),
            in_specs=[
                pl.BlockSpec((tile_b, in_f), lambda i: (i, 0)),   # x tile (pipelined)
                pl.BlockSpec((in_f, OUT_PAD), lambda i: (0, 0)),  # W resident
                pl.BlockSpec((1, OUT_PAD), lambda i: (0, 0)),     # b resident
            ],
            out_specs=pl.BlockSpec((tile_b, OUT_PAD), lambda i: (i, 0)),
        ),
        compiler_params=pltpu.CompilerParams(
            dimension_semantics=("parallel",),
            vmem_limit_bytes=32 * 1024 * 1024,
        ),
    )(x, w_pad, b_pad)

    return y[:batch, :out_f]


if __name__ == "__main__":
    input_size = 27
    output_size = 4
    batch = 8

    key = jax.random.PRNGKey(0)
    kx, kw, kb = jax.random.split(key, 3)

    # Deterministic init mirroring nn.Linear's uniform(-1/sqrt(fan_in), ...).
    bound = 1.0 / jnp.sqrt(jnp.float32(input_size))
    w = jax.random.uniform(
        kw, (output_size, input_size), jnp.float32, -bound, bound
    )  # PyTorch layout [out, in]
    b = jax.random.uniform(kb, (output_size,), jnp.float32, -bound, bound)
    x = jax.random.normal(kx, (batch, input_size), jnp.float32)

    y = logistics_forward(x, w, b)
    y = jax.block_until_ready(y)

    # Reference check in plain JAX.
    y_ref = x @ w.T + b[None, :]
    assert y.shape == (batch, output_size)
    assert jnp.allclose(y, y_ref, atol=1e-5, rtol=1e-5)

    print("KERNEL_OK")
</pallas_src>

<mosaic_0001>
module attributes {stable_mosaic.version = 11 : i64} {
  func.func @_linear_kernel(%arg0: i32, %arg1: memref<8x27xf32, #tpu.memory_space<vmem>>, %arg2: memref<27x128xf32, #tpu.memory_space<vmem>>, %arg3: memref<1x128xf32, #tpu.memory_space<vmem>>, %arg4: memref<8x128xf32, #tpu.memory_space<vmem>>) attributes {dimension_semantics = [#tpu.dimension_semantics<parallel>], iteration_bounds = array<i64: 1>, scalar_prefetch = 0 : i64, scratch_operands = 0 : i64, tpu.core_type = #tpu.core_type<tc>, window_params = [{transform_indices = @transform_0, window_bounds = array<i64: 8, 27>}, {pipeline_mode = #tpu.pipeline_mode<synchronous>, transform_indices = @transform_1, window_bounds = array<i64: 27, 128>}, {pipeline_mode = #tpu.pipeline_mode<synchronous>, transform_indices = @transform_2, window_bounds = array<i64: 1, 128>}, {transform_indices = @transform_3, window_bounds = array<i64: 8, 128>}]} {
    %c0 = arith.constant 0 : index
    %c0_0 = arith.constant 0 : index
    %0 = vector.load %arg1[%c0, %c0_0] : memref<8x27xf32, #tpu.memory_space<vmem>>, vector<8x27xf32>
    %c0_1 = arith.constant 0 : index
    %c0_2 = arith.constant 0 : index
    %1 = vector.load %arg2[%c0_1, %c0_2] : memref<27x128xf32, #tpu.memory_space<vmem>>, vector<27x128xf32>
    %cst = arith.constant dense<0.000000e+00> : vector<8x128xf32>
    %2 = tpu.matmul %0, %1, %cst {dimension_numbers = #tpu.dot_dimension_numbers<[1], [0], [0], [1], [0, 0, 1, 1], [], []>} : vector<8x27xf32>, vector<27x128xf32>, vector<8x128xf32> -> vector<8x128xf32>
    %c0_3 = arith.constant 0 : index
    %c0_4 = arith.constant 0 : index
    %3 = vector.load %arg3[%c0_3, %c0_4] : memref<1x128xf32, #tpu.memory_space<vmem>>, vector<1x128xf32>
    %4 = vector.broadcast %3 : vector<1x128xf32> to vector<8x128xf32>
    %5 = arith.addf %2, %4 : vector<8x128xf32>
    %c0_5 = arith.constant 0 : index
    %c0_6 = arith.constant 0 : index
    %6 = vector.load %arg4[%c0_5, %c0_6] : memref<8x128xf32, #tpu.memory_space<vmem>>, vector<8x128xf32>
    tpu.vector_store %arg4[%c0_5, %c0_6], %5 {strides = array<i32>} : memref<8x128xf32, #tpu.memory_space<vmem>>, vector<8x128xf32>,
    return
  }
  func.func @transform_0(%arg0: i32) -> (i32, i32) {
    %c0_i32 = arith.constant 0 : i32
    %c0_i32_0 = arith.constant 0 : i32
    return %arg0, %c0_i32 : i32, i32
  }
  func.func @transform_1(%arg0: i32) -> (i32, i32) {
    %c0_i32 = arith.constant 0 : i32
    %c0_i32_0 = arith.constant 0 : i32
    %c0_i32_1 = arith.constant 0 : i32
    return %c0_i32, %c0_i32_0 : i32, i32
  }
  func.func @transform_2(%arg0: i32) -> (i32, i32) {
    %c0_i32 = arith.constant 0 : i32
    %c0_i32_0 = arith.constant 0 : i32
    %c0_i32_1 = arith.constant 0 : i32
    return %c0_i32, %c0_i32_0 : i32, i32
  }
  func.func @transform_3(%arg0: i32) -> (i32, i32) {
    %c0_i32 = arith.constant 0 : i32
    %c0_i32_0 = arith.constant 0 : i32
    return %arg0, %c0_i32 : i32, i32
  }
}

</mosaic_0001>

<bundles_post_ra>
// kernel: tpu_custom_call.1
= control target key start
LH: loop header
LB: loop body
LE: loop exit
PB: predicated region body
PF: predicated region fallthrough
CT: control target
= control target key end

     0   :  { %8 = vsyncpa [#allocation3], 0  ;;  %s330_s0 = inlined_call_operand.hbm [shape: f32[8,27], index: 0, kind: input, shape index: {}]   ;;  %s331_s1 = inlined_call_operand.hbm [shape: f32[27,128], index: 1, kind: input, shape index: {}]   ;;  %s332_s2 = inlined_call_operand.vmem [shape: f32[1,128], index: 2, kind: input, shape index: {}]   ;;  %s333_s3 = inlined_call_operand.hbm [shape: f32[8,128], index: 3, kind: output, shape index: {}]  }
   0x1   :  { %9 = vsyncpa [#allocation6], 0 }
   0x2   :  { %10 = vsyncpa [#allocation4], 0  ;;  %s255_s12 = smov [#allocation2]   ;;  %s256_s14 = smov [#allocation5]  }
   0x3   :  { %s17_s13 = sshll.u32 %s255_s12, 4  ;;  %s26_s15 = sshll.u32 %s256_s14, 4  ;;  %s18_s13 = int_to_ptr.vmem [resolvable:$true] %s17_s13  ;;  %s284_s15 = int_to_ptr.vmem [resolvable:$true] %s26_s15 }
   0x4   :  { %s183_s18 = scalar_lea.hbm %s330_s0, 128 }
   0x5   :  { %p184_p0 = scmp.ne.s32.totalorder %s330_s0, %s183_s18  ;;  %p187_p1 = scmp.lt.u32.totalorder %s183_s18, %s330_s0 }
   0x7   :  { %p189_p2 = pnand %p187_p1, %p184_p0 }
   0x9   :  { %192 = shalt.err (!%p189_p2)
}
   0xa   :  { %s193_s23 = scalar_lea.vmem %s18_s13, 128  ;;  %p198_p4 = scmp.lt.s32.totalorder %s18_s13, %s18_s13 }
   0xb   :  { %p194_p3 = scmp.ne.s32.totalorder %s18_s13, %s193_s23  ;;  %p199_p5 = scmp.lt.s32.totalorder %s193_s23, %s193_s23 }
   0xd   :  { %p200_p6 = por %p199_p5, %p198_p4 }
   0xf   :  { %p201_p7 = pnand %p200_p6, %p194_p3 }
  0x11   :  { %204 = shalt.err (!%p201_p7)
}
  0x12   :  { %20 = dma.hbm_to_vmem [thread:$0]  %s330_s0, 128, %s18_s13, [#allocation3]  }
  0x13   :  { %s205_s28 = scalar_lea.hbm %s331_s1, 512 }
  0x14   :  { %p206_p8 = scmp.ne.s32.totalorder %s331_s1, %s205_s28  ;;  %p209_p9 = scmp.lt.u32.totalorder %s205_s28, %s331_s1 }
  0x16   :  { %p211_p10 = pnand %p209_p9, %p206_p8 }
  0x18   :  { %214 = shalt.err (!%p211_p10)
}
  0x19   :  { %s215_s6 = scalar_lea.vmem %s284_s15, 512  ;;  %p220_p12 = scmp.lt.s32.totalorder %s284_s15, %s284_s15 }
  0x1a   :  { %p216_p11 = scmp.ne.s32.totalorder %s284_s15, %s215_s6  ;;  %p221_p13 = scmp.lt.s32.totalorder %s215_s6, %s215_s6 }
  0x1c   :  { %p222_p0 = por %p221_p13, %p220_p12 }
  0x1e   :  { %p223_p1 = pnand %p222_p0, %p216_p11 }
  0x20   :  { %226 = shalt.err (!%p223_p1)
}
  0x21   :  { %s257_s0 = smov 128   ;;  %s258_s7 = smov 8  }
  0x22   :  { %32 = dma.hbm_to_vmem [thread:$0]  %s331_s1, 512, %s284_s15, [#allocation6], %s257_s0, %s257_s0, %s258_s7  }
  0x23   :  { %249 = dma.done.wait [#allocation3], 128  }
  0x24   :  { %250 = vsyncadd [#allocation3], 4294967168 }
  0x25   :  { %251 = dma.done.wait [#allocation6], 512  }
  0x26   :  { %252 = vsyncadd [#allocation6], 4294966784  ;;  %v259_v0 = vmov 0.0|0.0   ;;  %vm260_vm0 = vmmov 0   ;;  %v261_v1 = vmov 0.0   ;;  %v42_v2 = vld [vmem:[#allocation5] sm:$0xff] }
  0x27   :  { %167 = vmatprep.subr.bf16.mxu0 %v259_v0  ;;  %164 = vmatprep.mubr.msk.f32.mxu0 %vm260_vm0, %v261_v1  ;;  %v43_v3 = vld [vmem:[#allocation5 + $0x8] sm:$0xff]  ;;  %v44_v4 = vld [vmem:[#allocation5 + $0x10] sm:$0xff]  ;;  %v45_v6 = vld [vmem:[#allocation5 + $0x18] sm:$0x7]  ;;  %vm57_vm1 = vcmask 1042432   ;;  %vm262_vm2 = vmmov 1  }
  0x28   :  { %v168_v5 = vpack.c.bf16 %v43_v3, %v42_v2  ;;  %v171_v7 = vpack.c.bf16 %v45_v6, %v44_v4  ;;  %vm172_vm3 = vmpackc.low %vm57_vm1, %vm262_vm2  ;;  %v41_v8 = vld [vmem:[#allocation2] sm:$0xff]  ;;  %vm53_vm4 = vcmask 220160   ;;  %s263_s11 = smov [#allocation7]  }
  0x29   :  { %v148_v9 = vld [vmem:[%s332_s2] ss:$0 sm:$0xff]  ;;  %s138_s12 = sshll.u32 %s263_s11, 4  ;;  %s139_s12 = int_to_ptr.vmem [resolvable:$true] %s138_s12 }
  0x2a   :  { %169 = vmatpush3.bf16.msra.mxu0 %v168_v5  ;;  %s227_s13 = scalar_lea.vmem %s139_s12, 128  ;;  %p232_p3 = scmp.lt.s32.totalorder %s139_s12, %s139_s12 }
  0x2b   :  { %170 = vmatprep.subr.bf16.mxu0 %v259_v0  ;;  %p228_p2 = scmp.ne.s32.totalorder %s139_s12, %s227_s13  ;;  %p233_p4 = scmp.lt.s32.totalorder %s227_s13, %s227_s13 }
  0x2d   :  { %p234_p5 = por %p233_p4, %p232_p3 }
  0x2e   :  { %173 = vmatpush3.bf16.msk.msra.mxu0 %vm172_vm3, %v171_v7 }
  0x2f   :  { %p235_p6 = pnand %p234_p5, %p228_p2 }
  0x31   :  { %165 = vmatmul.mubr.msk.f32.vlgmr.msra.gmra.mrb[0].mxu0 %vm53_vm4, %v41_v8 }
 0x104   :  { %v127_v10 = vpop.f32.mrb[0].mxu0 }
 0x105   :  { %v128_v11 = vadd.f32 %v148_v9, %v127_v10  ;;  %v166_v12 = vpop.f32.mrb[1].mxu0 }
 0x107   :  { %131 = vst [vmem:[#allocation7] sm:$0xff] %v128_v11 }
 0x108   :  { %238 = shalt.err (!%p235_p6)
}
 0x109   :  { %s239_s16 = scalar_lea.hbm %s333_s3, 128 }
 0x10a   :  { %p240_p7 = scmp.ne.s32.totalorder %s333_s3, %s239_s16  ;;  %p243_p8 = scmp.lt.u32.totalorder %s239_s16, %s333_s3 }
 0x10c   :  { %p245_p9 = pnand %p243_p8, %p240_p7 }
 0x10e   :  { %248 = shalt.err (!%p245_p9)
}
 0x10f   :  { %141 = dma.vmem_to_hbm [thread:$0]  %s139_s12, 128, %s333_s3, [#allocation4]  }
 0x110   :  { %253 = dma.done.wait [#allocation4], 128  }
 0x111   :  { %254 = vsyncadd [#allocation4], 4294967168 }
 0x112   :  { %145 = vsyncpa [#allocation3], 1 }
 0x113   :  { %146 = vsyncpa [#allocation6], 1 }
 0x114   :  { %147 = vsyncpa [#allocation4], 1 }

</bundles_post_ra>
